<compile_context>
chip_gen: v7x
topology: tpu7x:2x2x1
jax: 0.10.0
libtpu: 0.0.40
codegen_flags: <defaults>
</compile_context>

<pallas_src>
import math
import jax
import jax.numpy as jnp
from jax.experimental import pallas as pl
from jax.experimental.pallas import tpu as pltpu


def _make_conv_kernel(wp, cin, tap_len):
    """Kernel factory closing over static padded width, Cin and valid column count."""

    def kernel(x_ref, w_ref, shift_ref, o_ref, patch_ref):
        # x_ref     : (1, Cin, Hp*Wp)  bf16  flattened zero-padded input (one batch element)
        # w_ref     : (Cout, 9*Cin)    bf16  conv weights with BN scale folded in
        # shift_ref : (Cout, 1)        f32   folded BN shift (beta - mean*scale)
        # o_ref     : (1, Cout, L)     f32   conv outputs on the flattened padded grid
        # patch_ref : (9*Cin, L)       bf16  VMEM scratch: shifted-view patch matrix
        #
        # Build the (9*Cin, L) patch matrix from nine statically-shifted views of the
        # flattened padded input (in-VMEM shifts; no im2col tensor ever hits HBM).
        for t in range(9):
            kh, kw = divmod(t, 3)
            d = kh * wp + kw
            patch_ref[t * cin:(t + 1) * cin, :] = x_ref[0, :, pl.ds(d, tap_len)]

        # Single MXU matmul, K = 9*Cin, lane-dense (Cout, L) result, f32 accumulation.
        acc = jnp.dot(w_ref[...], patch_ref[...],
                      preferred_element_type=jnp.float32)

        # Folded-BN shift + ReLU epilogue in f32 (scale already folded into w_ref).
        out = jnp.maximum(acc + shift_ref[...], 0.0)
        o_ref[0] = out.astype(o_ref.dtype)

    return kernel


def conv3x3_bn_relu(x_nchw, w_oihw, gamma, beta, running_mean, running_var,
                    *, stride=1, eps=1e-5):
    """Conv(3x3, pad=1, no bias) -> BatchNorm2d(eval) -> ReLU, PyTorch NCHW semantics."""
    N, Cin, H, W = x_nchw.shape
    Cout = w_oihw.shape[0]
    pad = 1
    Hp, Wp = H + 2 * pad, W + 2 * pad
    Hout = (H + 2 * pad - 3) // stride + 1
    Wout = (W + 2 * pad - 3) // stride + 1
    P = Hp * Wp
    # Largest column count such that every tap offset d = kh*Wp + kw stays in-bounds.
    L = P - (2 * Wp + 2)

    # --- wrapper glue (single fused XLA pass): pad, flatten, cast to bf16 ---
    xp = jnp.pad(x_nchw, ((0, 0), (0, 0), (pad, pad), (pad, pad)))
    x_flat = xp.reshape(N, Cin, P).astype(jnp.bfloat16)

    # Fold BN scale into the conv weights; keep only the additive shift for the kernel.
    inv_std = jax.lax.rsqrt(running_var.astype(jnp.float32) + eps)
    scale = gamma.astype(jnp.float32) * inv_std                       # (Cout,)
    shift = (beta.astype(jnp.float32)
             - running_mean.astype(jnp.float32) * scale).reshape(Cout, 1)
    w_folded = w_oihw.astype(jnp.float32) * scale[:, None, None, None]  # OIHW
    # Reorder to (Cout, 9*Cin) with flat index ((kh*3+kw)*Cin + ci) matching the patch rows.
    w2 = jnp.transpose(w_folded, (0, 2, 3, 1)).reshape(Cout, 9 * Cin).astype(jnp.bfloat16)

    kernel = _make_conv_kernel(Wp, Cin, L)

    z = pl.pallas_call(
        kernel,
        out_shape=jax.ShapeDtypeStruct((N, Cout, L), jnp.float32),
        grid_spec=pltpu.PrefetchScalarGridSpec(
            num_scalar_prefetch=0,
            grid=(N,),
            in_specs=[
                # activations: one batch element per grid step
                pl.BlockSpec((1, Cin, P), lambda n: (n, 0, 0)),
                # weights / shift: constant index map -> fetched once, reused every step
                pl.BlockSpec((Cout, 9 * Cin), lambda n: (0, 0)),
                pl.BlockSpec((Cout, 1), lambda n: (0, 0)),
            ],
            out_specs=pl.BlockSpec((1, Cout, L), lambda n: (n, 0, 0)),
            scratch_shapes=[pltpu.VMEM((9 * Cin, L), jnp.bfloat16)],
        ),
        compiler_params=pltpu.CompilerParams(
            dimension_semantics=("parallel",)),
    )(x_flat, w2, shift)

    # Crop the padded-grid result back to the strided valid output positions (NCHW).
    z = jnp.pad(z, ((0, 0), (0, 0), (0, P - L))).reshape(N, Cout, Hp, Wp)
    out = z[:, :,
            0:(Hout - 1) * stride + 1:stride,
            0:(Wout - 1) * stride + 1:stride]
    return out.astype(x_nchw.dtype)


class BlockConv1:
    """JAX/Pallas mirror of Block_Conv1 (BatchNorm in eval mode, synthetic params)."""

    def __init__(self, key, in_planes, planes, stride=1, use_branch=False, b_num=2):
        self.in_planes = in_planes
        self.planes = planes
        self.stride = stride
        self.use_branch = use_branch
        self.b_num = b_num
        self.b_channels = planes // b_num

        kw, kg, kb, km, kv = jax.random.split(key, 5)
        fan_in = in_planes * 9
        self.conv1_w = (jax.random.normal(kw, (planes, in_planes, 3, 3), jnp.float32)
                        * math.sqrt(2.0 / fan_in))                       # OIHW, like PyTorch
        self.bn_gamma = 1.0 + 0.1 * jax.random.normal(kg, (planes,), jnp.float32)
        self.bn_beta = 0.1 * jax.random.normal(kb, (planes,), jnp.float32)
        self.bn_mean = 0.1 * jax.random.normal(km, (planes,), jnp.float32)
        self.bn_var = jnp.abs(1.0 + 0.1 * jax.random.normal(kv, (planes,), jnp.float32))

        if use_branch:
            # copy_weight2twin semantics: twin i uses the first b_channels*(i+1)
            # output channels of the main conv / bn parameters.
            self.twin_params = []
            for i in range(b_num):
                c = self.b_channels * (i + 1)
                self.twin_params.append((self.conv1_w[:c], self.bn_gamma[:c],
                                         self.bn_beta[:c], self.bn_mean[:c],
                                         self.bn_var[:c]))

        self.b_idx = b_num  # default: main path; set_mask overrides

    def set_mask(self, channel_width):
        self.channel_width = channel_width
        if not self.use_branch:
            self.b_idx = self.b_num
        else:
            self.b_idx = (channel_width - 1) // self.b_channels
        # TODO(synk): DynamicConv2d's internal per-channel width mask is not defined in the
        # reference snippet; only the branch selection that forward() exercises is reproduced.

    def params_for_forward(self):
        if self.b_idx == self.b_num:
            return (self.conv1_w, self.bn_gamma, self.bn_beta,
                    self.bn_mean, self.bn_var)
        return self.twin_params[self.b_idx]

    def __call__(self, x_nchw):
        w, g, b, m, v = self.params_for_forward()
        return conv3x3_bn_relu(x_nchw, w, g, b, m, v, stride=self.stride)


def _reference(x, w_oihw, gamma, beta, mean, var, *, stride=1, eps=1e-5):
    """Pure-JAX reference using the same bf16-rounded operands as the kernel."""
    scale = gamma * jax.lax.rsqrt(var + eps)
    shift = beta - mean * scale
    wq = (w_oihw * scale[:, None, None, None]).astype(jnp.bfloat16).astype(jnp.float32)
    xq = x.astype(jnp.bfloat16).astype(jnp.float32)
    y = jax.lax.conv_general_dilated(
        xq, wq, window_strides=(stride, stride), padding=((1, 1), (1, 1)),
        dimension_numbers=("NCHW", "OIHW", "NCHW"),
        precision=jax.lax.Precision.HIGHEST)
    return jnp.maximum(y + shift.reshape(1, -1, 1, 1), 0.0)


if __name__ == "__main__":
    key = jax.random.PRNGKey(0)
    kx, kp = jax.random.split(key)

    # PyTorch-style NCHW input: batch=2, in_planes=4, 16x16 spatial
    x = jax.random.normal(kx, (2, 4, 16, 16), jnp.float32)

    block = BlockConv1(kp, in_planes=4, planes=8, stride=1, use_branch=True, b_num=2)

    # branch path: channel_width=8 -> b_idx = (8-1)//4 = 1 -> conv1_twin.b_1 (8 out channels)
    block.set_mask(8)
    out_branch = block(x)
    jax.block_until_ready(out_branch)
    assert out_branch.shape == (2, 8, 16, 16)
    ref_branch = _reference(x, *block.params_for_forward(), stride=block.stride)
    assert bool(jnp.allclose(out_branch, ref_branch, atol=2e-2, rtol=2e-2))

    # main path: b_idx == b_num -> conv1
    block.use_branch = False
    block.set_mask(8)
    out_main = block(x)
    jax.block_until_ready(out_main)
    assert out_main.shape == (2, 8, 16, 16)
    assert bool(jnp.all(out_main >= 0.0))  # ReLU applied
    ref_main = _reference(x, *block.params_for_forward(), stride=block.stride)
    assert bool(jnp.allclose(out_main, ref_main, atol=2e-2, rtol=2e-2))

    print("KERNEL_OK")
</pallas_src>

<mosaic_0001>
module attributes {stable_mosaic.version = 11 : i64} {
  func.func @kernel(%arg0: i32, %arg1: memref<1x4x324xbf16, #tpu.memory_space<vmem>>, %arg2: memref<8x36xbf16, #tpu.memory_space<vmem>>, %arg3: memref<8x1xf32, #tpu.memory_space<vmem>>, %arg4: memref<1x8x286xf32, #tpu.memory_space<vmem>>, %arg5: memref<36x286xbf16, #tpu.memory_space<vmem>>) attributes {dimension_semantics = [#tpu.dimension_semantics<parallel>], iteration_bounds = array<i64: 2>, scalar_prefetch = 0 : i64, scratch_operands = 1 : i64, tpu.core_type = #tpu.core_type<tc>, window_params = [{transform_indices = @transform_0, window_bounds = array<i64: 1, 4, 324>}, {pipeline_mode = #tpu.pipeline_mode<synchronous>, transform_indices = @transform_1, window_bounds = array<i64: 8, 36>}, {pipeline_mode = #tpu.pipeline_mode<synchronous>, transform_indices = @transform_2, window_bounds = array<i64: 8, 1>}, {transform_indices = @transform_3, window_bounds = array<i64: 1, 8, 286>}]} {
    %c0 = arith.constant 0 : index
    %c0_0 = arith.constant 0 : index
    %c0_1 = arith.constant 0 : index
    %0 = vector.load %arg1[%c0, %c0_0, %c0_1] : memref<1x4x324xbf16, #tpu.memory_space<vmem>>, vector<1x4x286xbf16>
    %1 = vector.shape_cast %0 : vector<1x4x286xbf16> to vector<4x286xbf16>
    %c0_2 = arith.constant 0 : index
    %c0_3 = arith.constant 0 : index
    %2 = vector.load %arg5[%c0_2, %c0_3] : memref<36x286xbf16, #tpu.memory_space<vmem>>, vector<4x286xbf16>
    tpu.vector_store %arg5[%c0_2, %c0_3], %1 {strides = array<i32>} : memref<36x286xbf16, #tpu.memory_space<vmem>>, vector<4x286xbf16>,
    %c0_4 = arith.constant 0 : index
    %c0_5 = arith.constant 0 : index
    %c1 = arith.constant 1 : index
    %3 = vector.load %arg1[%c0_4, %c0_5, %c1] : memref<1x4x324xbf16, #tpu.memory_space<vmem>>, vector<1x4x286xbf16>
    %4 = vector.shape_cast %3 : vector<1x4x286xbf16> to vector<4x286xbf16>
    %c4 = arith.constant 4 : index
    %c0_6 = arith.constant 0 : index
    %5 = vector.load %arg5[%c4, %c0_6] : memref<36x286xbf16, #tpu.memory_space<vmem>>, vector<4x286xbf16>
    tpu.vector_store %arg5[%c4, %c0_6], %4 {strides = array<i32>} : memref<36x286xbf16, #tpu.memory_space<vmem>>, vector<4x286xbf16>,
    %c0_7 = arith.constant 0 : index
    %c0_8 = arith.constant 0 : index
    %c2 = arith.constant 2 : index
    %6 = vector.load %arg1[%c0_7, %c0_8, %c2] : memref<1x4x324xbf16, #tpu.memory_space<vmem>>, vector<1x4x286xbf16>
    %7 = vector.shape_cast %6 : vector<1x4x286xbf16> to vector<4x286xbf16>
    %c8 = arith.constant 8 : index
    %c0_9 = arith.constant 0 : index
    %8 = vector.load %arg5[%c8, %c0_9] : memref<36x286xbf16, #tpu.memory_space<vmem>>, vector<4x286xbf16>
    tpu.vector_store %arg5[%c8, %c0_9], %7 {strides = array<i32>} : memref<36x286xbf16, #tpu.memory_space<vmem>>, vector<4x286xbf16>,
    %c0_10 = arith.constant 0 : index
    %c0_11 = arith.constant 0 : index
    %c18 = arith.constant 18 : index
    %9 = vector.load %arg1[%c0_10, %c0_11, %c18] : memref<1x4x324xbf16, #tpu.memory_space<vmem>>, vector<1x4x286xbf16>
    %10 = vector.shape_cast %9 : vector<1x4x286xbf16> to vector<4x286xbf16>
    %c12 = arith.constant 12 : index
    %c0_12 = arith.constant 0 : index
    %11 = vector.load %arg5[%c12, %c0_12] : memref<36x286xbf16, #tpu.memory_space<vmem>>, vector<4x286xbf16>
    tpu.vector_store %arg5[%c12, %c0_12], %10 {strides = array<i32>} : memref<36x286xbf16, #tpu.memory_space<vmem>>, vector<4x286xbf16>,
    %c0_13 = arith.constant 0 : index
    %c0_14 = arith.constant 0 : index
    %c19 = arith.constant 19 : index
    %12 = vector.load %arg1[%c0_13, %c0_14, %c19] : memref<1x4x324xbf16, #tpu.memory_space<vmem>>, vector<1x4x286xbf16>
    %13 = vector.shape_cast %12 : vector<1x4x286xbf16> to vector<4x286xbf16>
    %c16 = arith.constant 16 : index
    %c0_15 = arith.constant 0 : index
    %14 = vector.load %arg5[%c16, %c0_15] : memref<36x286xbf16, #tpu.memory_space<vmem>>, vector<4x286xbf16>
    tpu.vector_store %arg5[%c16, %c0_15], %13 {strides = array<i32>} : memref<36x286xbf16, #tpu.memory_space<vmem>>, vector<4x286xbf16>,
    %c0_16 = arith.constant 0 : index
    %c0_17 = arith.constant 0 : index
    %c20 = arith.constant 20 : index
    %15 = vector.load %arg1[%c0_16, %c0_17, %c20] : memref<1x4x324xbf16, #tpu.memory_space<vmem>>, vector<1x4x286xbf16>
    %16 = vector.shape_cast %15 : vector<1x4x286xbf16> to vector<4x286xbf16>
    %c20_18 = arith.constant 20 : index
    %c0_19 = arith.constant 0 : index
    %17 = vector.load %arg5[%c20_18, %c0_19] : memref<36x286xbf16, #tpu.memory_space<vmem>>, vector<4x286xbf16>
    tpu.vector_store %arg5[%c20_18, %c0_19], %16 {strides = array<i32>} : memref<36x286xbf16, #tpu.memory_space<vmem>>, vector<4x286xbf16>,
    %c0_20 = arith.constant 0 : index
    %c0_21 = arith.constant 0 : index
    %c36 = arith.constant 36 : index
    %18 = vector.load %arg1[%c0_20, %c0_21, %c36] : memref<1x4x324xbf16, #tpu.memory_space<vmem>>, vector<1x4x286xbf16>
    %19 = vector.shape_cast %18 : vector<1x4x286xbf16> to vector<4x286xbf16>
    %c24 = arith.constant 24 : index
    %c0_22 = arith.constant 0 : index
    %20 = vector.load %arg5[%c24, %c0_22] : memref<36x286xbf16, #tpu.memory_space<vmem>>, vector<4x286xbf16>
    tpu.vector_store %arg5[%c24, %c0_22], %19 {strides = array<i32>} : memref<36x286xbf16, #tpu.memory_space<vmem>>, vector<4x286xbf16>,
    %c0_23 = arith.constant 0 : index
    %c0_24 = arith.constant 0 : index
    %c37 = arith.constant 37 : index
    %21 = vector.load %arg1[%c0_23, %c0_24, %c37] : memref<1x4x324xbf16, #tpu.memory_space<vmem>>, vector<1x4x286xbf16>
    %22 = vector.shape_cast %21 : vector<1x4x286xbf16> to vector<4x286xbf16>
    %c28 = arith.constant 28 : index
    %c0_25 = arith.constant 0 : index
    %23 = vector.load %arg5[%c28, %c0_25] : memref<36x286xbf16, #tpu.memory_space<vmem>>, vector<4x286xbf16>
    tpu.vector_store %arg5[%c28, %c0_25], %22 {strides = array<i32>} : memref<36x286xbf16, #tpu.memory_space<vmem>>, vector<4x286xbf16>,
    %c0_26 = arith.constant 0 : index
    %c0_27 = arith.constant 0 : index
    %c38 = arith.constant 38 : index
    %24 = vector.load %arg1[%c0_26, %c0_27, %c38] : memref<1x4x324xbf16, #tpu.memory_space<vmem>>, vector<1x4x286xbf16>
    %25 = vector.shape_cast %24 : vector<1x4x286xbf16> to vector<4x286xbf16>
    %c32 = arith.constant 32 : index
    %c0_28 = arith.constant 0 : index
    %26 = vector.load %arg5[%c32, %c0_28] : memref<36x286xbf16, #tpu.memory_space<vmem>>, vector<4x286xbf16>
    tpu.vector_store %arg5[%c32, %c0_28], %25 {strides = array<i32>} : memref<36x286xbf16, #tpu.memory_space<vmem>>, vector<4x286xbf16>,
    %c0_29 = arith.constant 0 : index
    %c0_30 = arith.constant 0 : index
    %27 = vector.load %arg2[%c0_29, %c0_30] : memref<8x36xbf16, #tpu.memory_space<vmem>>, vector<8x36xbf16>
    %c0_31 = arith.constant 0 : index
    %c0_32 = arith.constant 0 : index
    %28 = vector.load %arg5[%c0_31, %c0_32] : memref<36x286xbf16, #tpu.memory_space<vmem>>, vector<36x286xbf16>
    %cst = arith.constant dense<0.000000e+00> : vector<8x286xf32>
    %29 = tpu.matmul %27, %28, %cst {dimension_numbers = #tpu.dot_dimension_numbers<[1], [0], [0], [1], [0, 0, 1, 1], [], []>} : vector<8x36xbf16>, vector<36x286xbf16>, vector<8x286xf32> -> vector<8x286xf32>
    %c0_33 = arith.constant 0 : index
    %c0_34 = arith.constant 0 : index
    %30 = vector.load %arg3[%c0_33, %c0_34] : memref<8x1xf32, #tpu.memory_space<vmem>>, vector<8x1xf32>
    %31 = vector.broadcast %30 : vector<8x1xf32> to vector<8x286xf32>
    %32 = arith.addf %29, %31 : vector<8x286xf32>
    %cst_35 = arith.constant 0.000000e+00 : f32
    %33 = vector.broadcast %cst_35 : f32 to vector<8x286xf32>
    %34 = arith.maximumf %32, %33 : vector<8x286xf32>
    %c0_36 = arith.constant 0 : index
    %c0_37 = arith.constant 0 : index
    %c0_38 = arith.constant 0 : index
    %35 = vector.load %arg4[%c0_36, %c0_37, %c0_38] : memref<1x8x286xf32, #tpu.memory_space<vmem>>, vector<1x8x286xf32>
    %36 = vector.shape_cast %35 : vector<1x8x286xf32> to vector<8x286xf32>
    %37 = vector.shape_cast %34 : vector<8x286xf32> to vector<1x8x286xf32>
    tpu.vector_store %arg4[%c0_36, %c0_37, %c0_38], %37 {strides = array<i32>} : memref<1x8x286xf32, #tpu.memory_space<vmem>>, vector<1x8x286xf32>,
    return
  }
  func.func @transform_0(%arg0: i32) -> (i32, i32, i32) {
    %c0_i32 = arith.constant 0 : i32
    %c0_i32_0 = arith.constant 0 : i32
    %c0_i32_1 = arith.constant 0 : i32
    return %arg0, %c0_i32, %c0_i32_0 : i32, i32, i32
  }
  func.func @transform_1(%arg0: i32) -> (i32, i32) {
    %c0_i32 = arith.constant 0 : i32
    %c0_i32_0 = arith.constant 0 : i32
    %c0_i32_1 = arith.constant 0 : i32
    return %c0_i32, %c0_i32_0 : i32, i32
  }
  func.func @transform_2(%arg0: i32) -> (i32, i32) {
    %c0_i32 = arith.constant 0 : i32
    %c0_i32_0 = arith.constant 0 : i32
    %c0_i32_1 = arith.constant 0 : i32
    return %c0_i32, %c0_i32_0 : i32, i32
  }
  func.func @transform_3(%arg0: i32) -> (i32, i32, i32) {
    %c0_i32 = arith.constant 0 : i32
    %c0_i32_0 = arith.constant 0 : i32
    %c0_i32_1 = arith.constant 0 : i32
    return %arg0, %c0_i32, %c0_i32_0 : i32, i32, i32
  }
}

</mosaic_0001>

<bundles_post_ra>
// kernel: tpu_custom_call.1
= control target key start
LH: loop header
LB: loop body
LE: loop exit
PB: predicated region body
PF: predicated region fallthrough
CT: control target
= control target key end

     0   :  { %8 = vsyncpa [#allocation4], 0  ;;  %s1159_s0 = inlined_call_operand.hbm [shape: bf16[2,4,324], index: 0, kind: input, shape index: {}]   ;;  %s1160_s1 = inlined_call_operand.vmem [shape: bf16[8,36], index: 1, kind: input, shape index: {}]   ;;  %s1161_s2 = inlined_call_operand.vmem [shape: f32[8,1], index: 2, kind: input, shape index: {}]   ;;  %s1162_s3 = inlined_call_operand.hbm [shape: f32[2,8,286], index: 3, kind: output, shape index: {}]  }
   0x1   :  { %10 = vsyncpa [#allocation4 + $0x1], 0 }
   0x2   :  { %11 = vsyncpa [#allocation5], 0 }
   0x3   :  { %13 = vsyncpa [#allocation5 + $0x1], 0  ;;  %s946_s12 = smov 0   ;;  %s948_s13 = smov 0  }
   0x4   :  { %s950_s14 = smov 0   ;;  %s952_s15 = smov 0  }
   0x5 LB: > { %s967_s16 = sadd.s32 4294967295, %s910_s15   ;;  %s696_s17 = sadd.s32 4294967294, %s910_s15   ;;  %s910_s15 = sphi %s952_s15, %s1176_s15   ;;  %s906_s14 = sphi %s950_s14, %s1175_s14   ;;  %s902_s13 = sphi %s948_s13, %s1174_s13   ;;  %s898_s12 = sphi %s946_s12, %s1173_s12  }
   0x6   : > { %s971_s18 = sadd.s32 1, %s910_s15   ;;  %s26_s19 = sadd.s32 1, %s906_s14 }
   0x7   : > { %s23_s20 = ssub.s32 %s910_s15, %s971_s18  ;;  %p33_p0 = scmp.ne.s32.totalorder %s906_s14, %s902_s13 }
   0x8   : > { %p24_p1 = scmp.eq.s32.totalorder %s23_s20, 0  ;;  %p34_p2 = scmp.eq.s32.totalorder %s910_s15, 0 }
   0x9   : > { %p39_p3 = scmp.ne.s32.totalorder %s902_s13, %s898_s12  ;;  %p40_p4 = scmp.eq.s32.totalorder %s967_s16, 0 }
   0xa   : > { %s983_s21 = scalar_select %p24_p1, %s906_s14, %s26_s19  }
   0xb   : > { %p35_p5 = por %p34_p2, %p33_p0  ;;  %p985_p6 = por %p40_p4, %p39_p3 }
   0xc   : > { %p105_p7 = scmp.eq.s32.totalorder %s967_s16, 1  ;;  %p111_p8 = scmp.eq.s32.totalorder %s696_s17, 1 }
   0xd   : > { %p748_p10 = scmp.lt.s32.totalorder %s910_s15, 2  ;;  %s137_s25 = sand.u32 1, %s906_s14  }
   0xe   : > { %p992_p11 = por %p105_p7, %p33_p0  ;;  %p996_p12 = por %p111_p8, %p39_p3 }
   0xf   : > { %s732_s26 = smul.u32 96, %s910_s15  ;;  %p1007_p13 = pnand %p748_p10, %p35_p5 }
  0x10   : > { %s1165_s23 = scalar_select %p992_p11, 1, 0 }
  0x11   : > { %s1166_s24 = scalar_select %p996_p12, 1, 0 }
  0x12   : > { %s731_s27 = smul.u32 6, %s137_s25  ;;  %s1005_s30 = scalar_lea.hbm %s1159_s0, %s732_s26 }
  0x13   : > { %s138_s7 = scalar_lea.sflag [#allocation4], %s137_s25  ;;  %s814_s8 = scalar_lea.hbm %s1005_s30, 96 }
  0x14   : > { %s141_s5 = scalar_lea.vmem [#allocation3], %s731_s27  ;;  %p815_p2 = scmp.ne.s32.totalorder %s1005_s30, %s814_s8 }
  0x15   : > { %s149_s6 = sshll.u32 %s141_s5, 4  ;;  %p816_p3 = pneg %p1007_p13  ;;  %s1012_s6 = int_to_ptr.vmem [resolvable:$true] %s149_s6 }
  0x16   : > { %s819_s11 = scalar_lea.hbm %s1159_s0, 192  ;;  %p820_p7 = scmp.lt.u32.totalorder %s1005_s30, %s1159_s0 }
  0x17   : > { %p817_p4 = pnand %p816_p3, %p815_p2  ;;  %p821_p8 = scmp.lt.u32.totalorder %s819_s11, %s814_s8 }
  0x18   : > { %p823_p9 = scmp.lt.u32.totalorder %s814_s8, %s1005_s30 }
  0x19   : > { %p818_p5 = pneg %p817_p4  ;;  %p822_p10 = por %p821_p8, %p820_p7 }
  0x1b   : > { %p824_p0 = por %p823_p9, %p822_p10 }
  0x1d   : > { %p825_p1 = pnand %p824_p0, %p818_p5 }
  0x1f   : > { %828 = shalt.err (!%p825_p1)
}
  0x20   : > { %s829_s20 = scalar_lea.vmem %s1012_s6, 96  ;;  %s912_s25 = smov [#allocation3]  }
  0x21   : > { %p830_p2 = scmp.ne.s32.totalorder %s1012_s6, %s829_s20  ;;  %s834_s26 = sshll.u32 %s912_s25, 4  ;;  %s835_s26 = int_to_ptr.vmem [resolvable:$false] %s834_s26 }
  0x22   : > { %s836_s27 = scalar_lea.vmem %s835_s26, 192  ;;  %p837_p11 = scmp.lt.s32.totalorder %s1012_s6, %s835_s26 }
  0x23   : > { %p832_p4 = pnand %p830_p2, %p816_p3  ;;  %p838_p7 = scmp.lt.s32.totalorder %s836_s27, %s829_s20 }
  0x25   : > { %p833_p12 = pneg %p832_p4  ;;  %p839_p8 = por %p838_p7, %p837_p11 }
  0x27   : > { %p840_p9 = pnand %p839_p8, %p833_p12 }
  0x29   : > { %843 = shalt.err (!%p840_p9)
}
  0x2a   : > { %743 = dma.hbm_to_vmem [thread:$0]  (!%p1007_p13), %s1005_s30, 96, %s1012_s6, %s138_s7  }
  0x2b   : > { %p1168_p0 = scmp.lt.s32.totalorder %s910_s15, 3  ;;  %p1169_p1 = scmp.ge.s32.totalorder %s910_s15, 1 }
  0x2d   : > { %p155_p3 = pnand %p1169_p1, %p1168_p0 }
  0x2e   : > { %s1045_s28 = sand.u32 (!%p155_p3), 1, %s902_s13  }
  0x2f   : > { %158 = sbr.rel (%p155_p3) target bundleno = 456 (0x1c8), region = 32  ;;  %s161_s5 = scalar_lea.sflag (!%p155_p3), [#allocation4], %s1045_s28 }
  0x30   : > { %s733_s29 = smul.u32 (!%p155_p3), 6, %s1045_s28 }
  0x32   : > { %s1049_s8 = scalar_lea.vmem (!%p155_p3), [#allocation3], %s733_s29 }
  0x36   : > { %889 = dma.done.wait (%p985_p6), %s161_s5, 96  }
  0x37   : > { %891 = vsyncadd (%p985_p6), %s161_s5, 4294967200  ;;  %v201_v0 = vlaneseq  ;;  %v913_v1 = vmov 1983009808   ;;  %v242_v6 = vld [vmem:[%s1049_s8] sm:$0x3f]  ;;  %s914_s22 = smov 126  }
  0x38   : > { %v199_v2 = vunpack.c.l.s4 %v913_v1  ;;  %v210_v7 = vld [vmem:[%s1049_s8] sm:$0x3f]  ;;  %v244_v12 = vcombine.high %v242_v6, %v242_v6  ;;  %s915_s30 = smov 127   ;;  %s916_s4 = smov 110   ;;  %vm208_vm0 = vcmask 238592   ;;  %v918_v24 = vmov 0.0  }
  0x39   : > { %v202_v3 = vshrl.u32 %v201_v0, 7  ;;  %v272_v8 = vld [vmem:[%s1049_s8] sm:$0x3f]  ;;  %v212_v14 = vcombine.low %v210_v7, %v210_v7  ;;  %s917_s6 = smov 109   ;;  %721 = vmatprep.subr.bf16.mxu1 %v918_v24  ;;  %s919_s7 = smov 108   ;;  %vm923_vm1 = vmmov 0  }
  0x3a   : > { %v200_v4 = vunpack.c.0.s8 %v199_v2  ;;  %v302_v11 = vld [vmem:[%s1049_s8] sm:$0x3f]  ;;  %v274_v21 = vcombine.low %v272_v8, %v272_v8  ;;  %s920_s9 = smov 92   ;;  %s921_s10 = smov 91   ;;  %727 = vmatprep.mubr.msk.bf16.mxu1 %vm923_vm1, %v918_v24  ;;  %v924_v42 = vmov 0   ;;  %vm240_vm2 = vcmask 240642  }
  0x3b   : > { %v188_v13 = vld [vmem:[%s1049_s8] sm:$0x3f]  ;;  %v304_v17 = vcombine.high %v302_v11, %v302_v11  ;;  %s922_s11 = smov 90   ;;  %555 = vmatprep.mubr.bf16.mxu0 %v924_v42  ;;  %794 = vset.pattern.permute.xlu0 %v924_v42  ;;  %vm233_vm3 = vcmask 1043456   ;;  %vm266_vm4 = vcmask 1031168   ;;  %vm235_vm5 = vcmask 1039360  }
  0x3c   : > { %v1055_v5 = vsub.s32 %v200_v4, %v202_v3  ;;  %701 = vst.sshfl [vmem:[#allocation2] sm:$0xf pattern:$0x76325410] %v188_v13  ;;  %v190_v18 = vcombine.high %v188_v13, %v188_v13  ;;  %v332_v22 = vld [vmem:[%s1049_s8] sm:$0x3f] }
  0x3d   : > { %v334_v27 = vcombine.low %v332_v22, %v332_v22  ;;  %v362_v28 = vld [vmem:[%s1049_s8] sm:$0x3f]  ;;  %vm326_vm6 = vcmask 891904   ;;  %vm296_vm7 = vcmask 900096   ;;  %vm356_vm8 = vcmask 883712   ;;  %s734_s26 = smul.u32 24, %s1045_s28 }
  0x3e   : > { %v251_v9 = vrot.slane %v242_v6, %v1055_v5  ;;  %v226_v10 = vrot.slane %v210_v7, %v1055_v5  ;;  %v288_v15 = vrot.slane %v272_v8, %v1055_v5  ;;  %v311_v16 = vrot.slane %v302_v11, %v1055_v5  ;;  %v392_v32 = vld [vmem:[%s1049_s8] sm:$0x3f]  ;;  %s735_s27 = smul.u32 384, %s967_s16  ;;  %s612_s16 = scalar_lea.sflag [#allocation5], %s1045_s28 }
  0x3f   : > { %v258_v19 = vrot.slane %v244_v12, %v1055_v5  ;;  %v219_v20 = vrot.slane %v212_v14, %v1055_v5  ;;  %v204_v23 = vrot.slane %v190_v18, %v1055_v5  ;;  %v318_v25 = vrot.slane %v304_v17, %v1055_v5  ;;  %v422_v36 = vld [vmem:[%s1049_s8] sm:$0x3f]  ;;  %s186_s29 = scalar_lea.vmem [#allocation6], %s734_s26  ;;  %p1170_p11 = scmp.ne.s32.totalorder %s1165_s23, 0 }
  0x40   : > { %259 = vrot.lane.b32.xlu1 %v251_v9, %s914_s22  ;;  %229 = vrot.lane.b32.xlu0 %v226_v10, %s915_s30  ;;  %v281_v26 = vrot.slane %v274_v21, %v1055_v5  ;;  %v348_v29 = vrot.slane %v332_v22, %v1055_v5  ;;  %v341_v30 = vrot.slane %v334_v27, %v1055_v5  ;;  %v463_v43 = vld [vmem:[%s1161_s2] sm:$0xff]  ;;  %vm386_vm9 = vcmask 752640   ;;  %s626_s5 = sshll.u32 %s186_s29, 4  ;;  %s1117_s5 = int_to_ptr.vmem [resolvable:$true] %s626_s5 }
  0x41   : > { %209 = vst.msk [vmem:[#allocation2 + $0x8] sm:$0x3] %vm208_vm0, %v204_v23  ;;  %v364_v31 = vcombine.high %v362_v28, %v362_v28  ;;  %v371_v34 = vrot.slane %v362_v28, %v1055_v5  ;;  %v394_v35 = vcombine.low %v392_v32, %v392_v32  ;;  %v408_v37 = vrot.slane %v392_v32, %v1055_v5 }
  0x42   : > { %v424_v39 = vcombine.high %v422_v36, %v422_v36  ;;  %v431_v41 = vrot.slane %v422_v36, %v1055_v5  ;;  %vm416_vm10 = vcmask 744448   ;;  %vm446_vm11 = vcmask 736256  }
  0x43   : > { %v378_v33 = vrot.slane %v364_v31, %v1055_v5  ;;  %v401_v38 = vrot.slane %v394_v35, %v1055_v5  ;;  %vm513_vm12 = vcmask 1041408   ;;  %vm509_vm13 = vcmask 293888  }
  0x44   : > { %291 = vrot.lane.b32.xlu1 %v288_v15, %s916_s4  ;;  %319 = vrot.lane.b32.xlu0 %v311_v16, %s917_s6  ;;  %v438_v40 = vrot.slane %v424_v39, %v1055_v5  ;;  %vm609_vm14 = vcmask 244736  }
  0x48   : > { %261 = vrot.lane.b32.xlu1 %v258_v19, %s914_s22  ;;  %227 = vrot.lane.b32.xlu0 %v219_v20, %s915_s30  ;;  %s1115_s30 = scalar_lea.hbm %s1162_s3, %s735_s27 }
  0x4c   : > { %321 = vrot.lane.b32.xlu1 %v318_v25, %s917_s6  ;;  %289 = vrot.lane.b32.xlu0 %v281_v26, %s916_s4  ;;  %s844_s4 = scalar_lea.vmem %s1117_s5, 384  ;;  %s925_s6 = smov [#allocation6]  }
  0x4d   : > { %p845_p6 = scmp.ne.s32.totalorder %s1117_s5, %s844_s4 }
  0x4f   : > { %p846_p12 = pnand %p845_p6, %p1170_p11 }
  0x50   : > { %351 = vrot.lane.b32.xlu1 %v348_v29, %s919_s7  ;;  %349 = vrot.lane.b32.xlu0 %v341_v30, %s919_s7  ;;  %s848_s7 = sshll.u32 %s925_s6, 4  ;;  %s849_s7 = int_to_ptr.vmem [resolvable:$false] %s848_s7 }
  0x51   : > { %p847_p13 = pneg %p846_p12  ;;  %p851_p5 = scmp.lt.s32.totalorder %s1117_s5, %s849_s7 }
  0x54   : > { %381 = vrot.lane.b32.xlu1 %v378_v33, %s920_s9  ;;  %379 = vrot.lane.b32.xlu0 %v371_v34, %s920_s9  ;;  %s850_s9 = scalar_lea.vmem %s849_s7, 768 }
  0x55   : > { %p852_p10 = scmp.lt.s32.totalorder %s850_s9, %s844_s4 }
  0x57   : > { %p853_p2 = por %p852_p10, %p851_p5 }
  0x58   : > { %411 = vrot.lane.b32.xlu1 %v408_v37, %s921_s10  ;;  %409 = vrot.lane.b32.xlu0 %v401_v38, %s921_s10 }
  0x59   : > { %p854_p4 = pnand %p853_p2, %p847_p13 }
  0x5c   : > { %441 = vrot.lane.b32.xlu1 %v438_v40, %s922_s11  ;;  %439 = vrot.lane.b32.xlu0 %v431_v41, %s922_s11  ;;  %v452_v40 = vld [vmem:[%s1160_s1] sm:$0xf] }
  0x60   : > { %466 = vperm.xlu0 %794, %v463_v43  }
  0xb2   : > { %v260_v44 = vpop.permute.xlu1 %259  ;;  %v230_v45 = vpop.permute.xlu0 %229 }
  0xb3   : > { %241 = vst.msk [vmem:[#allocation2 + $0x8] sm:$0xc] %vm240_vm2, %v230_v45  ;;  %v263_v50 = vrot.slane %v260_v44, 4  ;;  %v232_v51 = vrot.slane %v230_v45, 4 }
  0xb6   : > { %v292_v46 = vpop.permute.xlu1 %291  ;;  %v320_v47 = vpop.permute.xlu0 %319 }
  0xb7   : > { %301 = vst.msk [vmem:[#allocation2 + $0x14] sm:$0xc] %vm240_vm2, %v292_v46  ;;  %v294_v60 = vrot.slane %v292_v46, 4  ;;  %v323_v61 = vrot.slane %v320_v47, 4 }
  0xba   : > { %v262_v48 = vpop.permute.xlu1 %261  ;;  %v228_v49 = vpop.permute.xlu0 %227 }
  0xbb   : > { %v264_v52 = vrot.slane %v262_v48, 4  ;;  %271 = vst.msk [vmem:[#allocation2 + $0x14] sm:$0x3] %vm208_vm0, %v262_v48  ;;  %v231_v53 = vrot.slane %v228_v49, 4 }
  0xbd   : > { %v265_v54 = vsel %vm233_vm3, %v263_v50, %v264_v52  ;;  %v234_v55 = vsel %vm233_vm3, %v231_v53, %v232_v51 }
  0xbe   : > { %v267_v56 = vsel %vm266_vm4, %v260_v44, %v265_v54  ;;  %v236_v57 = vsel %vm235_vm5, %v228_v49, %v234_v55  ;;  %v322_v58 = vpop.permute.xlu1 %321  ;;  %v290_v59 = vpop.permute.xlu0 %289 }
  0xbf   : > { %270 = vst [vmem:[#allocation2 + $0xc] sm:$0x33] %v267_v56  ;;  %239 = vst [vmem:[#allocation2] sm:$0xcc] %v236_v57  ;;  %v324_v62 = vrot.slane %v322_v58, 4  ;;  %v293_v63 = vrot.slane %v290_v59, 4 }
  0xc0   : > { %331 = vst.msk [vmem:[#allocation2 + $0x20] sm:$0x3] %vm208_vm0, %v322_v58 }
  0xc1   : > { %v325_v0 = vsel %vm233_vm3, %v323_v61, %v324_v62  ;;  %v295_v1 = vsel %vm233_vm3, %v293_v63, %v294_v60 }
  0xc2   : > { %v327_v2 = vsel %vm326_vm6, %v320_v47, %v325_v0  ;;  %v297_v3 = vsel %vm296_vm7, %v290_v59, %v295_v1  ;;  %v352_v4 = vpop.permute.xlu1 %351  ;;  %v350_v5 = vpop.permute.xlu0 %349  ;;  %v804_v6 = vld [vmem:[#allocation2 + $0x8] ss:$12 sps:$4 sm:$0xff]  }
  0xc3   : > { %330 = vst [vmem:[#allocation2 + $0x18] sm:$0x33] %v327_v2  ;;  %300 = vst [vmem:[#allocation2 + $0xc] sm:$0xcc] %v297_v3  ;;  %v354_v7 = vrot.slane %v352_v4, 4  ;;  %v353_v8 = vrot.slane %v350_v5, 4  ;;  %722 = vmatpush3.bf16.msra.mxu1 %v804_v6 }
  0xc4   : > { %361 = vst.msk [vmem:[#allocation2 + $0x20] sm:$0xc] %vm240_vm2, %v352_v4  ;;  %723 = vmatprep.subr.bf16.mxu1 %v918_v24 }
  0xc5   : > { %v355_v9 = vsel %vm233_vm3, %v353_v8, %v354_v7 }
  0xc6   : > { %v357_v10 = vsel %vm356_vm8, %v350_v5, %v355_v9  ;;  %v382_v11 = vpop.permute.xlu1 %381  ;;  %v380_v12 = vpop.permute.xlu0 %379  ;;  %v453_v16 = vld [vmem:[#allocation2] sm:$0xff] }
  0xc7   : > { %360 = vst [vmem:[#allocation2 + $0x18] sm:$0xcc] %v357_v10  ;;  %v384_v13 = vrot.slane %v382_v11, 4  ;;  %391 = vst.msk [vmem:[#allocation2 + $0x2c] sm:$0x3] %vm208_vm0, %v382_v11  ;;  %v383_v14 = vrot.slane %v380_v12, 4 }
  0xc9   : > { %v385_v15 = vsel %vm233_vm3, %v383_v14, %v384_v13 }
  0xca   : > { %v387_v17 = vsel %vm386_vm9, %v380_v12, %v385_v15  ;;  %v412_v18 = vpop.permute.xlu1 %411  ;;  %v410_v19 = vpop.permute.xlu0 %409  ;;  %v455_v20 = vld [vmem:[#allocation2 + $0xc] sm:$0xff] }
  0xcb   : > { %v805_v21 = vld [vmem:[#allocation2 + $0x4] ss:$12 sps:$4 sm:$0xff]   ;;  %390 = vst [vmem:[#allocation2 + $0x24] sm:$0x33] %v387_v17  ;;  %v414_v22 = vrot.slane %v412_v18, 4  ;;  %v413_v23 = vrot.slane %v410_v19, 4  ;;  %v702_v25 = vcombine.low %v453_v16, %v455_v20 }
  0xcc   : > { %421 = vst.msk [vmem:[#allocation2 + $0x2c] sm:$0xc] %vm240_vm2, %v412_v18  ;;  %523 = vmatprep.subr.bf16.mxu0 %v805_v21 }
  0xcd   : > { %v415_v26 = vsel %vm233_vm3, %v413_v23, %v414_v22  ;;  %524 = vmatpush1.bf16.msra.mxu0 %v702_v25 }
  0xce   : > { %v417_v27 = vsel %vm416_vm10, %v410_v19, %v415_v26  ;;  %v442_v28 = vpop.permute.xlu1 %441  ;;  %v440_v29 = vpop.permute.xlu0 %439 }
  0xcf   : > { %420 = vst [vmem:[#allocation2 + $0x24] sm:$0xcc] %v417_v27  ;;  %v444_v30 = vrot.slane %v442_v28, 4  ;;  %451 = vst.msk [vmem:[#allocation2 + $0x38] sm:$0x3] %vm208_vm0, %v442_v28  ;;  %v443_v31 = vrot.slane %v440_v29, 4 }
  0xd1   : > { %v445_v32 = vsel %vm233_vm3, %v443_v31, %v444_v30 }
  0xd2   : > { %v447_v33 = vsel %vm446_vm11, %v440_v29, %v445_v32 }
  0xd3   : > { %v807_v34 = vld [vmem:[#allocation2 + $0x20] ss:$12 sps:$4 sm:$0xff]   ;;  %450 = vst [vmem:[#allocation2 + $0x30] sm:$0x33] %v447_v33 }
  0xd4   : > { %724 = vmatpush3.bf16.msra.mxu1 %v807_v34 }
  0xd5   : > { %725 = vmatprep.subr.bf16.mxu1 %v918_v24 }
  0xd6   : > { %v808_v35 = vld [vmem:[#allocation2 + $0x1c] ss:$12 sps:$4 sm:$0xff]   ;;  %v810_v36 = vld [vmem:[#allocation2 + $0x18] ss:$12 sps:$4 sm:$0xff]  }
  0xd7   : > { %v811_v37 = vld [vmem:[#allocation2 + $0x38] ss:$0 sps:$4 sm:$0x33]   ;;  %525 = vmatprep.subr.bf16.mxu0 %v808_v35 }
  0xd8   : > { %526 = vmatpush1.bf16.msra.mxu0 %v810_v36  ;;  %v521_v38 = vsel %vm513_vm12, %v811_v37, 0 }
  0xd9   : > { %726 = vmatpush3.bf16.msra.mxu1 %v521_v38 }
  0xda   : > { %v461_v39 = vld [vmem:[#allocation2 + $0x30] sm:$0x33] }
  0xdb   : > { %v709_v41 = vcombine.high %v461_v39, %v461_v39  ;;  %v708_v42 = vcombine.low %v461_v39, %v461_v39 }
  0xdc   : > { %728 = vmatmul.mubr.msk.bf16.vlgmr.msra.gmra.mrb[0].mxu1 %vm509_vm13, %v452_v40 }
  0xdd   : > { %711 = vmatprep.subr.msk.bf16.mxu0 %vm513_vm12, %v709_v41  ;;  %v515_v24 = vsel %vm513_vm12, %v708_v42, 0 }
  0xde   : > { %528 = vmatpush1.bf16.msra.mxu0 %v515_v24 }
  0xdf   : > { %v467_v43 = vpop.permute.xlu0 %466 }
  0xe1   : > { %712 = vmatmul.mubr.msk.bf16.vlgmr.msra.gmra.mrb[0].mxu0 %vm509_vm13, %v452_v40 }
 0x1af   : > { %v598_v44 = vpop.f32.mrb[0].mxu1 }
 0x1b0   : > { %v729_v45 = vpop.f32.mrb[1].mxu1  ;;  %v599_v46 = vadd.f32 %v598_v44, %v467_v43 }
 0x1b1   : > { %v601_v47 = vpop.f32.mrb[2].mxu1 }
 0x1b2   : > { %v606_v48 = vmax.f32 %v599_v46, 0.0  ;;  %v730_v49 = vpop.f32.mrb[3].mxu1 }
 0x1b4   : > { %v557_v50 = vpop.f32.mrb[0].mxu0  ;;  %610 = vst.msk [vmem:[%s186_s29 + $0x10] sm:$0xff] %vm609_vm14, %v606_v48 }
 0x1b5   : > { %v558_v51 = vadd.f32 %v557_v50, %v467_v43  ;;  %v559_v52 = vpop.f32.mrb[1].mxu0 }
 0x1b6   : > { %v560_v53 = vadd.f32 %v559_v52, %v467_v43  ;;  %v561_v54 = vpop.f32.mrb[2].mxu0 }
 0x1b7   : > { %v604_v55 = vmax.f32 %v558_v51, 0.0  ;;  %v562_v56 = vpop.f32.mrb[3].mxu0 }
 0x1b8   : > { %v605_v57 = vmax.f32 %v560_v53, 0.0 }
 0x1b9   : > { %607 = vst [vmem:[%s186_s29] sm:$0xff] %v604_v55 }
 0x1ba   : > { %608 = vst [vmem:[%s186_s29 + $0x8] sm:$0xff] %v605_v57 }
 0x1bb   : > { %857 = shalt.err (!%p854_p4)
}
 0x1bc   : > { %s858_s28 = scalar_lea.hbm %s1115_s30, 384  ;;  %s862_s17 = scalar_lea.hbm %s1162_s3, 768 }
 0x1bd   : > { %p859_p7 = scmp.ne.s32.totalorder %s1115_s30, %s858_s28  ;;  %p863_p0 = scmp.lt.u32.totalorder %s1115_s30, %s1162_s3 }
 0x1be   : > { %p864_p1 = scmp.lt.u32.totalorder %s862_s17, %s858_s28  ;;  %p866_p6 = scmp.lt.u32.totalorder %s858_s28, %s1115_s30 }
 0x1bf   : > { %p860_p8 = pnand %p859_p7, %p1170_p11 }
 0x1c0   : > { %p865_p3 = por %p864_p1, %p863_p0 }
 0x1c1   : > { %p861_p9 = pneg %p860_p8 }
 0x1c2   : > { %p867_p12 = por %p866_p6, %p865_p3 }
 0x1c4   : > { %p868_p13 = pnand %p867_p12, %p861_p9 }
 0x1c6   : > { %871 = shalt.err (!%p868_p13)
}
 0x1c7   : > { %738 = dma.vmem_to_hbm [thread:$0]  (%p1170_p11), %s1117_s5, 384, %s1115_s30, %s612_s16  }
 0x1c8 PF: > { %s638_s25 = sand.u32 1, %s898_s12   ;;  %p1171_p5 = scmp.ne.s32.totalorder %s1166_s24, 0 }
 0x1c9   : > { %p1172_p10 = scmp.ge.s32.totalorder %s910_s15, 2  ;;  %s639_s26 = scalar_lea.sflag [#allocation5], %s638_s25 }
 0x1cb   : > { %p745_p2 = pnand %p1172_p10, %p1171_p5 }
 0x1cd   : > { %893 = dma.done.wait (!%p745_p2), %s639_s26, 384  }
 0x1ce   : > { %895 = vsyncadd (!%p745_p2), %s639_s26, 4294966912  ;;  %p16_p4 = scmp.ge.s32.totalorder %s971_s18, 4   ;;  %s1173_s12 = smov %s902_s13 }
 0x1cf   : > { %s1174_s13 = smov %s906_s14  ;;  %s1175_s14 = smov %s983_s21 }
 0x1d0   : > { %s1176_s15 = smov %s971_s18  ;;  %18 = sbr.rel (!%p16_p4) target bundleno = 5 (0x5), region = 77 }
 0x1d7   :  { %644 = vsyncpa [#allocation4], 1 }
 0x1d8   :  { %646 = vsyncpa [#allocation4 + $0x1], 1 }
 0x1d9   :  { %647 = vsyncpa [#allocation5], 1 }
 0x1da   :  { %649 = vsyncpa [#allocation5 + $0x1], 1 }

</bundles_post_ra>
